<compile_context>
chip_gen: v6e
topology: v6e:2x2x1
jax: 0.10.0
libtpu: 0.0.40
codegen_flags: <defaults>
</compile_context>

<pallas_src>
import functools

import jax
import jax.numpy as jnp
from jax.experimental import pallas as pl
from jax.experimental.pallas import tpu as pltpu


# ----------------------------------------------------------------------------
# Fused CALayer kernel: one batch sample per grid step.
#   x_ref   : (1, H, W*C)   activation slab (lane-dense)
#   w1t_ref : (Cr, C)       first 1x1 conv weight  (PyTorch (Cr, C, 1, 1) squeezed)
#   b1_ref  : (Cr, 1)       first 1x1 conv bias
#   w2_ref  : (Cr, C)       second 1x1 conv weight (PyTorch (C, Cr, 1, 1) transposed)
#   b2_ref  : (1, C)        second 1x1 conv bias
#   o_ref   : (1, H, W*C)
# ----------------------------------------------------------------------------
def _ca_kernel(x_ref, w1t_ref, b1_ref, w2_ref, b2_ref, o_ref, *, H, W, C):
    x2d = x_ref[0].astype(jnp.float32)                       # (H, W*C)

    # ---- global average pool (per channel) ---------------------------------
    # Sublane reduce over H first (big -> small), then fold the W channel
    # groups with static lane slices (avoids a minor-dim-changing reshape).
    colsum = jnp.sum(x2d, axis=0, keepdims=True)              # (1, W*C)
    ch_sum = colsum[:, 0:C]
    for w in range(1, W):
        ch_sum = ch_sum + colsum[:, w * C:(w + 1) * C]        # (1, C)
    pooled = ch_sum * (1.0 / (H * W))                         # (1, C)

    # ---- squeeze-excite MLP on the VPU/XLU (M=1 matmuls would waste the MXU)
    z = jnp.sum(pooled * w1t_ref[...].astype(jnp.float32),
                axis=1, keepdims=True)                        # (Cr, 1)
    z = jnp.maximum(z + b1_ref[...].astype(jnp.float32), 0.0)
    s = jnp.sum(z * w2_ref[...].astype(jnp.float32),
                axis=0, keepdims=True)                        # (1, C)
    s = jax.nn.sigmoid(s + b2_ref[...].astype(jnp.float32))

    # ---- per-channel gate, tiled along the lane-dense W*C axis -------------
    s_tiled = jnp.concatenate([s] * W, axis=-1)               # (1, W*C)

    o_ref[0] = (x2d * s_tiled).astype(o_ref.dtype)


def ca_layer(x, w1t, b1, w2, b2):
    """Channel attention.  x: (B, H, W, C) NHWC."""
    B, H, W, C = x.shape
    Cr = w1t.shape[0]
    WC = W * C
    # Contiguous merge of the last two dims -> lane-dense last dim (W*C).
    x2 = x.reshape(B, H, WC)

    out = pl.pallas_call(
        functools.partial(_ca_kernel, H=H, W=W, C=C),
        out_shape=jax.ShapeDtypeStruct((B, H, WC), x.dtype),
        grid=(B,),
        in_specs=[
            pl.BlockSpec((1, H, WC), lambda b: (b, 0, 0)),
            pl.BlockSpec((Cr, C), lambda b: (0, 0)),
            pl.BlockSpec((Cr, 1), lambda b: (0, 0)),
            pl.BlockSpec((Cr, C), lambda b: (0, 0)),
            pl.BlockSpec((1, C), lambda b: (0, 0)),
        ],
        out_specs=pl.BlockSpec((1, H, WC), lambda b: (b, 0, 0)),
        compiler_params=pltpu.CompilerParams(
            dimension_semantics=("parallel",)),   # v7x: shard batch across 2 TCs
    )(x2, w1t, b1, w2, b2)
    return out.reshape(B, H, W, C)


# ----------------------------------------------------------------------------
# Pure-JAX reference (matches PyTorch CALayer.forward, NHWC layout).
# ----------------------------------------------------------------------------
def ca_layer_reference(x, w1t, b1, w2, b2):
    pooled = jnp.mean(x, axis=(1, 2))                              # (B, C)
    z = jnp.maximum(pooled @ w1t.T + b1.reshape(1, -1), 0.0)       # (B, Cr)
    s = jax.nn.sigmoid(z @ w2 + b2.reshape(1, -1))                 # (B, C)
    return x * s[:, None, None, :]


if __name__ == "__main__":
    B, H, W = 2, 16, 16
    channel, reduction = 32, 16
    Cr = channel // reduction

    key = jax.random.PRNGKey(0)
    kx, k1, k2, k3, k4 = jax.random.split(key, 5)
    x = jax.random.normal(kx, (B, H, W, channel), jnp.float32)        # NHWC
    w1t = 0.1 * jax.random.normal(k1, (Cr, channel), jnp.float32)     # conv_du[0].weight squeezed
    b1 = 0.1 * jax.random.normal(k2, (Cr, 1), jnp.float32)            # conv_du[0].bias
    w2 = 0.1 * jax.random.normal(k3, (Cr, channel), jnp.float32)      # conv_du[2].weight.T squeezed
    b2 = 0.1 * jax.random.normal(k4, (1, channel), jnp.float32)       # conv_du[2].bias

    out = jax.block_until_ready(ca_layer(x, w1t, b1, w2, b2))
    ref = jax.block_until_ready(ca_layer_reference(x, w1t, b1, w2, b2))

    assert out.shape == x.shape
    max_err = jnp.max(jnp.abs(out - ref))
    assert jnp.allclose(out, ref, rtol=1e-3, atol=1e-3), \
        f"mismatch: max abs diff {max_err}"
    print("KERNEL_OK")
</pallas_src>

<mosaic_0001>
module attributes {stable_mosaic.version = 11 : i64} {
  func.func @_ca_kernel(%arg0: i32, %arg1: memref<1x16x512xf32, #tpu.memory_space<vmem>>, %arg2: memref<2x32xf32, #tpu.memory_space<vmem>>, %arg3: memref<2x1xf32, #tpu.memory_space<vmem>>, %arg4: memref<2x32xf32, #tpu.memory_space<vmem>>, %arg5: memref<1x32xf32, #tpu.memory_space<vmem>>, %arg6: memref<1x16x512xf32, #tpu.memory_space<vmem>>) attributes {dimension_semantics = [#tpu.dimension_semantics<parallel>], iteration_bounds = array<i64: 2>, scalar_prefetch = 0 : i64, scratch_operands = 0 : i64, tpu.core_type = #tpu.core_type<tc>, window_params = [{transform_indices = @transform_0, window_bounds = array<i64: 1, 16, 512>}, {pipeline_mode = #tpu.pipeline_mode<synchronous>, transform_indices = @transform_1, window_bounds = array<i64: 2, 32>}, {pipeline_mode = #tpu.pipeline_mode<synchronous>, transform_indices = @transform_2, window_bounds = array<i64: 2, 1>}, {pipeline_mode = #tpu.pipeline_mode<synchronous>, transform_indices = @transform_3, window_bounds = array<i64: 2, 32>}, {pipeline_mode = #tpu.pipeline_mode<synchronous>, transform_indices = @transform_4, window_bounds = array<i64: 1, 32>}, {transform_indices = @transform_5, window_bounds = array<i64: 1, 16, 512>}]} {
    %c0 = arith.constant 0 : index
    %c0_0 = arith.constant 0 : index
    %c0_1 = arith.constant 0 : index
    %0 = vector.load %arg1[%c0, %c0_0, %c0_1] : memref<1x16x512xf32, #tpu.memory_space<vmem>>, vector<1x16x512xf32>
    %1 = vector.shape_cast %0 : vector<1x16x512xf32> to vector<16x512xf32>
    %cst = arith.constant dense<0.000000e+00> : vector<512xf32>
    %2 = vector.multi_reduction <add>, %1, %cst [0] : vector<16x512xf32> to vector<512xf32>
    %3 = vector.shape_cast %2 : vector<512xf32> to vector<1x512xf32>
    %4 = vector.extract_strided_slice %3 {offsets = [0, 0], sizes = [1, 32], strides = [1, 1]} : vector<1x512xf32> to vector<1x32xf32>
    %5 = vector.extract_strided_slice %3 {offsets = [0, 32], sizes = [1, 32], strides = [1, 1]} : vector<1x512xf32> to vector<1x32xf32>
    %6 = arith.addf %4, %5 : vector<1x32xf32>
    %7 = vector.extract_strided_slice %3 {offsets = [0, 64], sizes = [1, 32], strides = [1, 1]} : vector<1x512xf32> to vector<1x32xf32>
    %8 = arith.addf %6, %7 : vector<1x32xf32>
    %9 = vector.extract_strided_slice %3 {offsets = [0, 96], sizes = [1, 32], strides = [1, 1]} : vector<1x512xf32> to vector<1x32xf32>
    %10 = arith.addf %8, %9 : vector<1x32xf32>
    %11 = vector.extract_strided_slice %3 {offsets = [0, 128], sizes = [1, 32], strides = [1, 1]} : vector<1x512xf32> to vector<1x32xf32>
    %12 = arith.addf %10, %11 : vector<1x32xf32>
    %13 = vector.extract_strided_slice %3 {offsets = [0, 160], sizes = [1, 32], strides = [1, 1]} : vector<1x512xf32> to vector<1x32xf32>
    %14 = arith.addf %12, %13 : vector<1x32xf32>
    %15 = vector.extract_strided_slice %3 {offsets = [0, 192], sizes = [1, 32], strides = [1, 1]} : vector<1x512xf32> to vector<1x32xf32>
    %16 = arith.addf %14, %15 : vector<1x32xf32>
    %17 = vector.extract_strided_slice %3 {offsets = [0, 224], sizes = [1, 32], strides = [1, 1]} : vector<1x512xf32> to vector<1x32xf32>
    %18 = arith.addf %16, %17 : vector<1x32xf32>
    %19 = vector.extract_strided_slice %3 {offsets = [0, 256], sizes = [1, 32], strides = [1, 1]} : vector<1x512xf32> to vector<1x32xf32>
    %20 = arith.addf %18, %19 : vector<1x32xf32>
    %21 = vector.extract_strided_slice %3 {offsets = [0, 288], sizes = [1, 32], strides = [1, 1]} : vector<1x512xf32> to vector<1x32xf32>
    %22 = arith.addf %20, %21 : vector<1x32xf32>
    %23 = vector.extract_strided_slice %3 {offsets = [0, 320], sizes = [1, 32], strides = [1, 1]} : vector<1x512xf32> to vector<1x32xf32>
    %24 = arith.addf %22, %23 : vector<1x32xf32>
    %25 = vector.extract_strided_slice %3 {offsets = [0, 352], sizes = [1, 32], strides = [1, 1]} : vector<1x512xf32> to vector<1x32xf32>
    %26 = arith.addf %24, %25 : vector<1x32xf32>
    %27 = vector.extract_strided_slice %3 {offsets = [0, 384], sizes = [1, 32], strides = [1, 1]} : vector<1x512xf32> to vector<1x32xf32>
    %28 = arith.addf %26, %27 : vector<1x32xf32>
    %29 = vector.extract_strided_slice %3 {offsets = [0, 416], sizes = [1, 32], strides = [1, 1]} : vector<1x512xf32> to vector<1x32xf32>
    %30 = arith.addf %28, %29 : vector<1x32xf32>
    %31 = vector.extract_strided_slice %3 {offsets = [0, 448], sizes = [1, 32], strides = [1, 1]} : vector<1x512xf32> to vector<1x32xf32>
    %32 = arith.addf %30, %31 : vector<1x32xf32>
    %33 = vector.extract_strided_slice %3 {offsets = [0, 480], sizes = [1, 32], strides = [1, 1]} : vector<1x512xf32> to vector<1x32xf32>
    %34 = arith.addf %32, %33 : vector<1x32xf32>
    %cst_2 = arith.constant 3.906250e-03 : f32
    %35 = vector.broadcast %cst_2 : f32 to vector<1x32xf32>
    %36 = arith.mulf %34, %35 : vector<1x32xf32>
    %c0_3 = arith.constant 0 : index
    %c0_4 = arith.constant 0 : index
    %37 = vector.load %arg2[%c0_3, %c0_4] : memref<2x32xf32, #tpu.memory_space<vmem>>, vector<2x32xf32>
    %38 = vector.broadcast %36 : vector<1x32xf32> to vector<2x32xf32>
    %39 = arith.mulf %38, %37 : vector<2x32xf32>
    %cst_5 = arith.constant dense<0.000000e+00> : vector<2xf32>
    %40 = vector.multi_reduction <add>, %39, %cst_5 [1] : vector<2x32xf32> to vector<2xf32>
    %41 = vector.shape_cast %40 : vector<2xf32> to vector<2x1xf32>
    %c0_6 = arith.constant 0 : index
    %c0_7 = arith.constant 0 : index
    %42 = vector.load %arg3[%c0_6, %c0_7] : memref<2x1xf32, #tpu.memory_space<vmem>>, vector<2x1xf32>
    %43 = arith.addf %41, %42 : vector<2x1xf32>
    %cst_8 = arith.constant 0.000000e+00 : f32
    %44 = vector.broadcast %cst_8 : f32 to vector<2x1xf32>
    %45 = arith.maximumf %43, %44 : vector<2x1xf32>
    %c0_9 = arith.constant 0 : index
    %c0_10 = arith.constant 0 : index
    %46 = vector.load %arg4[%c0_9, %c0_10] : memref<2x32xf32, #tpu.memory_space<vmem>>, vector<2x32xf32>
    %47 = vector.broadcast %45 : vector<2x1xf32> to vector<2x32xf32>
    %48 = arith.mulf %47, %46 : vector<2x32xf32>
    %cst_11 = arith.constant dense<0.000000e+00> : vector<32xf32>
    %49 = vector.multi_reduction <add>, %48, %cst_11 [0] : vector<2x32xf32> to vector<32xf32>
    %50 = vector.shape_cast %49 : vector<32xf32> to vector<1x32xf32>
    %c0_12 = arith.constant 0 : index
    %c0_13 = arith.constant 0 : index
    %51 = vector.load %arg5[%c0_12, %c0_13] : memref<1x32xf32, #tpu.memory_space<vmem>>, vector<1x32xf32>
    %52 = arith.addf %50, %51 : vector<1x32xf32>
    %53 = arith.negf %52 : vector<1x32xf32>
    %54 = math.exp %53 : vector<1x32xf32>
    %cst_14 = arith.constant 1.000000e+00 : f32
    %55 = vector.broadcast %cst_14 : f32 to vector<1x32xf32>
    %56 = arith.addf %55, %54 : vector<1x32xf32>
    %57 = arith.divf %55, %56 : vector<1x32xf32>
    %58 = tpu.concatenate %57, %57, %57, %57, %57, %57, %57, %57, %57, %57, %57, %57, %57, %57, %57, %57 in 1 : vector<1x32xf32>, vector<1x32xf32>, vector<1x32xf32>, vector<1x32xf32>, vector<1x32xf32>, vector<1x32xf32>, vector<1x32xf32>, vector<1x32xf32>, vector<1x32xf32>, vector<1x32xf32>, vector<1x32xf32>, vector<1x32xf32>, vector<1x32xf32>, vector<1x32xf32>, vector<1x32xf32>, vector<1x32xf32> -> vector<1x512xf32>
    %59 = vector.broadcast %58 : vector<1x512xf32> to vector<16x512xf32>
    %60 = arith.mulf %1, %59 : vector<16x512xf32>
    %c0_15 = arith.constant 0 : index
    %c0_16 = arith.constant 0 : index
    %c0_17 = arith.constant 0 : index
    %61 = vector.load %arg6[%c0_15, %c0_16, %c0_17] : memref<1x16x512xf32, #tpu.memory_space<vmem>>, vector<1x16x512xf32>
    %62 = vector.shape_cast %61 : vector<1x16x512xf32> to vector<16x512xf32>
    %63 = vector.shape_cast %60 : vector<16x512xf32> to vector<1x16x512xf32>
    tpu.vector_store %arg6[%c0_15, %c0_16, %c0_17], %63 {strides = array<i32>} : memref<1x16x512xf32, #tpu.memory_space<vmem>>, vector<1x16x512xf32>,
    return
  }
  func.func @transform_0(%arg0: i32) -> (i32, i32, i32) {
    %c0_i32 = arith.constant 0 : i32
    %c0_i32_0 = arith.constant 0 : i32
    %c0_i32_1 = arith.constant 0 : i32
    return %arg0, %c0_i32, %c0_i32_0 : i32, i32, i32
  }
  func.func @transform_1(%arg0: i32) -> (i32, i32) {
    %c0_i32 = arith.constant 0 : i32
    %c0_i32_0 = arith.constant 0 : i32
    %c0_i32_1 = arith.constant 0 : i32
    return %c0_i32, %c0_i32_0 : i32, i32
  }
  func.func @transform_2(%arg0: i32) -> (i32, i32) {
    %c0_i32 = arith.constant 0 : i32
    %c0_i32_0 = arith.constant 0 : i32
    %c0_i32_1 = arith.constant 0 : i32
    return %c0_i32, %c0_i32_0 : i32, i32
  }
  func.func @transform_3(%arg0: i32) -> (i32, i32) {
    %c0_i32 = arith.constant 0 : i32
    %c0_i32_0 = arith.constant 0 : i32
    %c0_i32_1 = arith.constant 0 : i32
    return %c0_i32, %c0_i32_0 : i32, i32
  }
  func.func @transform_4(%arg0: i32) -> (i32, i32) {
    %c0_i32 = arith.constant 0 : i32
    %c0_i32_0 = arith.constant 0 : i32
    %c0_i32_1 = arith.constant 0 : i32
    return %c0_i32, %c0_i32_0 : i32, i32
  }
  func.func @transform_5(%arg0: i32) -> (i32, i32, i32) {
    %c0_i32 = arith.constant 0 : i32
    %c0_i32_0 = arith.constant 0 : i32
    %c0_i32_1 = arith.constant 0 : i32
    return %arg0, %c0_i32, %c0_i32_0 : i32, i32, i32
  }
}

</mosaic_0001>

<bundles_post_ra>
// kernel: tpu_custom_call.1
= control target key start
LH: loop header
LB: loop body
LE: loop exit
PB: predicated region body
PF: predicated region fallthrough
CT: control target
= control target key end

     0   :  { %10 = vsyncpa [#allocation3], 0  ;;  %s920_s0 = inlined_call_operand.hbm [shape: f32[2,16,512], index: 0, kind: input, shape index: {}]   ;;  %s921_s1 = inlined_call_operand.vmem [shape: f32[2,32], index: 1, kind: input, shape index: {}]   ;;  %s922_s2 = inlined_call_operand.vmem [shape: f32[2,1], index: 2, kind: input, shape index: {}]   ;;  %s923_s3 = inlined_call_operand.vmem [shape: f32[2,32], index: 3, kind: input, shape index: {}]   ;;  %s924_s4 = inlined_call_operand.vmem [shape: f32[1,32], index: 4, kind: input, shape index: {}]   ;;  %s925_s5 = inlined_call_operand.hbm [shape: f32[2,16,512], index: 5, kind: output, shape index: {}]  }
   0x1   :  { %12 = vsyncpa [#allocation3 + $0x1], 0 }
   0x2   :  { %13 = vsyncpa [#allocation4], 0 }
   0x3   :  { %15 = vsyncpa [#allocation4 + $0x1], 0  ;;  %s702_s18 = smov 0   ;;  %s704_s19 = smov 0  }
   0x4   :  { %s706_s20 = smov 0   ;;  %s708_s21 = smov 0  }
   0x5 LB: > { %s723_s22 = sadd.s32 4294967295, %s661_s21   ;;  %s493_s23 = sadd.s32 4294967294, %s661_s21   ;;  %s661_s21 = sphi %s708_s21, %s940_s21   ;;  %s657_s20 = sphi %s706_s20, %s939_s20   ;;  %s653_s19 = sphi %s704_s19, %s938_s19   ;;  %s649_s18 = sphi %s702_s18, %s937_s18  }
   0x6   : > { %s727_s24 = sadd.s32 1, %s661_s21   ;;  %s28_s25 = sadd.s32 1, %s657_s20 }
   0x7   : > { %s25_s26 = ssub.s32 %s661_s21, %s727_s24  ;;  %p35_p0 = scmp.ne.s32.totalorder %s657_s20, %s653_s19 }
   0x8   : > { %p26_p1 = scmp.eq.s32.totalorder %s25_s26, 0  ;;  %p36_p2 = scmp.eq.s32.totalorder %s661_s21, 0 }
   0x9   : > { %p41_p3 = scmp.ne.s32.totalorder %s653_s19, %s649_s18  ;;  %p42_p4 = scmp.eq.s32.totalorder %s723_s22, 0 }
   0xa   : > { %s739_s27 = scalar_select %p26_p1, %s657_s20, %s28_s25  }
   0xb   : > { %p741_p5 = por %p36_p2, %p35_p0  ;;  %p745_p6 = por %p42_p4, %p41_p3 }
   0xc   : > { %p149_p7 = scmp.eq.s32.totalorder %s723_s22, 1  ;;  %p155_p8 = scmp.eq.s32.totalorder %s493_s23, 1 }
   0xd   : > { %s929_s29 = scalar_select %p745_p6, 1, 0 }
   0xe   : > { %p522_p10 = scmp.lt.s32.totalorder %s661_s21, 2  ;;  %p752_p11 = por %p149_p7, %p35_p0 }
   0xf   : > { %p756_p12 = por %p155_p8, %p41_p3  ;;  %s187_s7 = sand.u32 1, %s657_s20  }
  0x10   : > { %s930_s30 = scalar_select %p752_p11, 1, 0 }
  0x11   : > { %s931_s6 = scalar_select %p756_p12, 1, 0 }
  0x12   : > { %s508_s8 = sshll.u32 %s661_s21, 10  ;;  %s496_s9 = sshll.u32 %s187_s7, 6 }
  0x13   : > { %s765_s12 = scalar_lea.hbm %s920_s0, %s508_s8  ;;  %s191_s13 = scalar_lea.vmem [#allocation2], %s496_s9 }
  0x14   : > { %s198_s14 = sshll.u32 %s191_s13, 4  ;;  %p769_p13 = pnand %p522_p10, %p741_p5  ;;  %s773_s14 = int_to_ptr.vmem [resolvable:$true] %s198_s14 }
  0x15   : > { %s775_s16 = scalar_lea.sflag [#allocation3], %s187_s7  ;;  %s569_s17 = scalar_lea.hbm %s765_s12, 1024 }
  0x16   : > { %p570_p0 = scmp.ne.s32.totalorder %s765_s12, %s569_s17  ;;  %p571_p1 = pneg %p769_p13 }
  0x17   : > { %s574_s26 = scalar_lea.hbm %s920_s0, 2048  ;;  %p575_p4 = scmp.lt.s32.totalorder %s765_s12, %s920_s0 }
  0x18   : > { %p572_p2 = pnand %p571_p1, %p570_p0  ;;  %p576_p5 = scmp.lt.s32.totalorder %s574_s26, %s569_s17 }
  0x1a   : > { %p573_p3 = pneg %p572_p2  ;;  %p577_p7 = por %p576_p5, %p575_p4 }
  0x1c   : > { %p578_p8 = pnand %p577_p7, %p573_p3 }
  0x1e   : > { %581 = shalt.err (!%p578_p8)
}
  0x1f   : > { %s582_s7 = scalar_lea.vmem %s773_s14, 1024  ;;  %s663_s9 = smov [#allocation2]  }
  0x20   : > { %p583_p10 = scmp.ne.s32.totalorder %s773_s14, %s582_s7  ;;  %s587_s10 = sshll.u32 %s663_s9, 4  ;;  %s588_s10 = int_to_ptr.vmem [resolvable:$false] %s587_s10 }
  0x21   : > { %s589_s11 = scalar_lea.vmem %s588_s10, 2048  ;;  %p590_p2 = scmp.lt.s32.totalorder %s773_s14, %s588_s10 }
  0x22   : > { %p585_p9 = pnand %p583_p10, %p571_p1  ;;  %p591_p12 = scmp.lt.s32.totalorder %s589_s11, %s582_s7 }
  0x24   : > { %p586_p0 = pneg %p585_p9  ;;  %p592_p11 = por %p591_p12, %p590_p2 }
  0x26   : > { %p593_p6 = pnand %p592_p11, %p586_p0 }
  0x28   : > { %596 = shalt.err (!%p593_p6)
}
  0x29   : > { %s664_s13 = smov 512   ;;  %s665_s17 = smov 32  }
  0x2a   : > { %517 = dma.hbm_to_vmem [thread:$0]  (!%p769_p13), %s765_s12, 1024, %s773_s14, %s775_s16, %s664_s13, %s664_s13, %s665_s17  }
  0x2b   : > { %p499_p9 = scmp.ge.s32.totalorder %s661_s21, 1  ;;  %p206_p1 = scmp.lt.s32.totalorder %s661_s21, 3 }
  0x2d   : > { %p207_p3 = pnand %p499_p9, %p206_p1 }
  0x2e   : > { %s799_s23 = sand.u32 (!%p207_p3), 1, %s653_s19   ;;  %p933_p6 = scmp.ne.s32.totalorder (!%p207_p3), %s929_s29, 0 }
  0x2f   : > { %210 = sbr.rel (%p207_p3) target bundleno = 683 (0x2ab), region = 40  ;;  %s500_s25 = sshll.u32 (!%p207_p3), %s799_s23, 6 }
  0x30   : > { %s213_s26 = scalar_lea.sflag (!%p207_p3), [#allocation3], %s799_s23  ;;  %s216_s28 = scalar_lea.vmem (!%p207_p3), [#allocation2], %s500_s25 }
  0x34   : > { %640 = dma.done.wait (%p933_p6), %s213_s26, 1024  }
  0x35   : > { %642 = vsyncadd (%p933_p6), %s213_s26, 4294966272  ;;  %v809_v0 = vld [vmem:[%s216_s28] sm:$0xff]  ;;  %v813_v2 = vld [vmem:[%s216_s28 + $0x8] sm:$0xff]  ;;  %s666_s29 = smov 96   ;;  %s667_s12 = smov 32   ;;  %v336_v57 = vlaneseq  ;;  %vm341_vm0 = vcmask 254976  }
  0x36   : > { %v811_v1 = vld [vmem:[%s216_s28 + $0x20] sm:$0xff]  ;;  %v817_v4 = vld [vmem:[%s216_s28 + $0x28] sm:$0xff]  ;;  %v819_v5 = vld [vmem:[%s216_s28 + $0x10] sm:$0xff]  ;;  %s668_s14 = smov 64   ;;  %vm380_vm1 = vcmask 261120   ;;  %vm382_vm2 = vcmask 523264  }
  0x37   : > { %v251_v3 = vadd.f32 %v811_v1, %v809_v0  ;;  %v821_v6 = vld [vmem:[%s216_s28 + $0x30] sm:$0xff]  ;;  %v258_v7 = vadd.f32 %v817_v4, %v813_v2  ;;  %v827_v9 = vld [vmem:[%s216_s28 + $0x18] sm:$0xff]  ;;  %v337_v61 = vshrl.u32 %v336_v57, 7  ;;  %vm384_vm3 = vcmask 785408   ;;  %s509_s17 = sshll.u32 %s723_s22, 10  ;;  %s242_s26 = scalar_lea.vmem [#allocation5], %s500_s25 }
  0x38   : > { %v265_v8 = vadd.f32 %v821_v6, %v819_v5  ;;  %v829_v10 = vld [vmem:[%s216_s28 + $0x38] sm:$0xff]  ;;  %s420_s28 = sshll.u32 %s242_s26, 4  ;;  %s870_s15 = scalar_lea.hbm %s925_s5, %s509_s17  ;;  %s876_s28 = int_to_ptr.vmem [resolvable:$true] %s420_s28 }
  0x39   : > { %v252_v11 = vrot.slane %v251_v3, 4  ;;  %v272_v12 = vadd.f32 %v829_v10, %v827_v9  ;;  %v259_v13 = vrot.slane %v258_v7, 4  ;;  %s407_s22 = scalar_lea.sflag [#allocation4], %s799_s23  ;;  %s597_s25 = scalar_lea.vmem %s876_s28, 1024 }
  0x3a   : > { %v266_v14 = vrot.slane %v265_v8, 4  ;;  %p598_p11 = scmp.ne.s32.totalorder %s876_s28, %s597_s25  ;;  %p934_p12 = scmp.ne.s32.totalorder %s930_s30, 0 }
  0x3b   : > { %v253_v15 = vadd.f32 %v252_v11, %v251_v3  ;;  %v260_v16 = vadd.f32 %v259_v13, %v258_v7  ;;  %v273_v19 = vrot.slane %v272_v12, 4  ;;  %v338_v3 = vsub.s32 0, %v337_v61  ;;  %v335_v11 = vld [vmem:[%s921_s1] sm:$0x3]  ;;  %s670_s16 = smov [#allocation5]  }
  0x3c   : > { %v267_v18 = vadd.f32 %v266_v14, %v265_v8  ;;  %p599_p13 = pnand %p598_p11, %p934_p12  ;;  %s601_s8 = sshll.u32 %s670_s16, 4  ;;  %s602_s8 = int_to_ptr.vmem [resolvable:$false] %s601_s8 }
  0x3d   : > { %v254_v17 = vrot.slane %v253_v15, 2  ;;  %v261_v20 = vrot.slane %v260_v16, 2  ;;  %v274_v25 = vadd.f32 %v273_v19, %v272_v12  ;;  %s603_s7 = scalar_lea.vmem %s602_s8, 2048  ;;  %p604_p5 = scmp.lt.s32.totalorder %s876_s28, %s602_s8 }
  0x3e   : > { %v268_v24 = vrot.slane %v267_v18, 2  ;;  %p600_p4 = pneg %p599_p13  ;;  %p605_p7 = scmp.lt.s32.totalorder %s603_s7, %s597_s25 }
  0x3f   : > { %v255_v21 = vadd.f32 %v254_v17, %v253_v15  ;;  %v262_v22 = vadd.f32 %v261_v20, %v260_v16  ;;  %v275_v30 = vrot.slane %v274_v25, 2  ;;  %v669_v15 = vmov 0   ;;  %v345_v16 = vld [vmem:[%s922_s2] sm:$0x3] }
  0x40   : > { %v269_v29 = vadd.f32 %v268_v24, %v267_v18  ;;  %563 = vset.pattern.permute.xlu1 %v669_v15  ;;  %564 = vset.pattern.permute.xlu0 %v669_v15  ;;  %v348_v20 = vld [vmem:[%s923_s3] sm:$0x3]  ;;  %p606_p8 = por %p605_p7, %p604_p5 }
  0x41   : > { %v256_v23 = vrot.slane %v255_v21, 1  ;;  %v263_v26 = vrot.slane %v262_v22, 1  ;;  %v276_v32 = vadd.f32 %v275_v30, %v274_v25 }
  0x42   : > { %v270_v31 = vrot.slane %v269_v29, 1  ;;  %p607_p10 = pnand %p606_p8, %p600_p4 }
  0x43   : > { %v257_v27 = vadd.f32 %v256_v23, %v255_v21  ;;  %v264_v28 = vadd.f32 %v263_v26, %v262_v22  ;;  %v277_v34 = vrot.slane %v276_v32, 1 }
  0x44   : > { %v271_v33 = vadd.f32 %v270_v31, %v269_v29  ;;  %v362_v29 = vld [vmem:[%s924_s4] sm:$0x1] }
  0x45   : > { %280 = vrot.lane.b32.xlu0 %v257_v27, %s666_s29  ;;  %288 = vrot.lane.b32.xlu1 %v257_v27, %s667_s12  ;;  %v278_v35 = vadd.f32 %v277_v34, %v276_v32 }
  0x49   : > { %284 = vrot.lane.b32.xlu0 %v257_v27, %s668_s14  ;;  %294 = vrot.lane.b32.xlu1 %v264_v28, %s666_s29 }
  0x4d   : > { %298 = vrot.lane.b32.xlu0 %v264_v28, %s668_s14  ;;  %302 = vrot.lane.b32.xlu1 %v264_v28, %s667_s12 }
  0x51   : > { %308 = vrot.lane.b32.xlu0 %v271_v33, %s666_s29  ;;  %312 = vrot.lane.b32.xlu1 %v271_v33, %s668_s14 }
  0x55   : > { %316 = vrot.lane.b32.xlu0 %v271_v33, %s667_s12  ;;  %322 = vrot.lane.b32.xlu1 %v278_v35, %s666_s29 }
  0x59   : > { %326 = vrot.lane.b32.xlu0 %v278_v35, %s668_s14  ;;  %330 = vrot.lane.b32.xlu1 %v278_v35, %s667_s12 }
  0xb7   : > { %v281_v36 = vpop.permute.xlu0 %280  ;;  %v289_v37 = vpop.permute.xlu1 %288 }
  0xb8   : > { %v283_v38 = vadd.f32 %v281_v36, %v257_v27 }
  0xbb   : > { %v285_v39 = vpop.permute.xlu0 %284  ;;  %v295_v41 = vpop.permute.xlu1 %294 }
  0xbc   : > { %v287_v40 = vadd.f32 %v285_v39, %v283_v38 }
  0xbe   : > { %v291_v42 = vadd.f32 %v289_v37, %v287_v40 }
  0xbf   : > { %v299_v44 = vpop.permute.xlu0 %298  ;;  %v303_v46 = vpop.permute.xlu1 %302 }
  0xc0   : > { %v292_v43 = vadd.f32 %v291_v42, %v264_v28 }
  0xc2   : > { %v297_v45 = vadd.f32 %v295_v41, %v292_v43 }
  0xc3   : > { %v309_v48 = vpop.permute.xlu0 %308  ;;  %v313_v51 = vpop.permute.xlu1 %312 }
  0xc4   : > { %v301_v47 = vadd.f32 %v299_v44, %v297_v45 }
  0xc6   : > { %v305_v49 = vadd.f32 %v303_v46, %v301_v47 }
  0xc7   : > { %v317_v53 = vpop.permute.xlu0 %316  ;;  %v323_v55 = vpop.permute.xlu1 %322 }
  0xc8   : > { %v306_v50 = vadd.f32 %v305_v49, %v271_v33 }
  0xca   : > { %v311_v52 = vadd.f32 %v309_v48, %v306_v50 }
  0xcb   : > { %v327_v59 = vpop.permute.xlu0 %326  ;;  %v331_v62 = vpop.permute.xlu1 %330 }
  0xcc   : > { %v315_v54 = vadd.f32 %v313_v51, %v311_v52 }
  0xce   : > { %v319_v56 = vadd.f32 %v317_v53, %v315_v54 }
  0xd0   : > { %v320_v58 = vadd.f32 %v319_v56, %v278_v35 }
  0xd2   : > { %v325_v60 = vadd.f32 %v323_v55, %v320_v58 }
  0xd4   : > { %v329_v63 = vadd.f32 %v327_v59, %v325_v60 }
  0xd6   : > { %v333_v7 = vadd.f32 %v331_v62, %v329_v63 }
  0xd8   : > { %v334_v8 = vmul.f32 0.00390625, %v333_v7 }
  0xda   : > { %v339_v12 = vrot.slane %v334_v8, %v338_v3 }
  0xdc   : > { %v340_v13 = vmul.f32 %v339_v12, %v335_v11 }
  0xde   : > { %v342_v14 = vsel %vm341_vm0, %v340_v13, 0.0 }
  0xdf   : > { %343 = vadd.xlane.f32.xlu0 %v342_v14 }
 0x168   : > { %v344_v17 = vpop.xlane.xlu0 %343 }
 0x169   : > { %v346_v18 = vadd.f32 %v345_v16, %v344_v17 }
 0x16b   : > { %v347_v19 = vmax.f32 %v346_v18, 0.0 }
 0x16d   : > { %351 = vperm.xlu1 %563, %v347_v19  }
 0x1e8   : > { %v352_v21 = vpop.permute.xlu1 %351 }
 0x1e9   : > { %v354_v22 = vmul.f32 %v352_v21, %v348_v20 }
 0x1eb   : > { %v355_v23 = vsel %vm341_vm0, %v354_v22, 0.0 }
 0x1ec   : > { %v356_v24 = vrot.slane %v355_v23, 4 }
 0x1ee   : > { %v357_v25 = vadd.f32 %v356_v24, %v355_v23 }
 0x1f0   : > { %v358_v26 = vrot.slane %v357_v25, 2 }
 0x1f2   : > { %v359_v27 = vadd.f32 %v358_v26, %v357_v25 }
 0x1f4   : > { %v360_v28 = vrot.slane %v359_v27, 1 }
 0x1f6   : > { %v361_v30 = vadd.f32 %v360_v28, %v359_v27 }
 0x1f8   : > { %v363_v31 = vadd.f32 %v362_v29, %v361_v30 }
 0x1fa   : > { %v502_v32 = vmul.f32 -1.442695, %v363_v31 }
 0x1fc   : > { %565 = vpow2.f32 %v502_v32 }
 0x209   : > { %v566_v33 = vpop.eup %565 }
 0x20a   : > { %v367_v34 = vadd.f32 1.0, %v566_v33 }
 0x20c   : > { %567 = vrcp.f32 %v367_v34 }
 0x219   : > { %v568_v35 = vpop.eup %567 }
 0x21a   : > { %371 = vrot.lane.b32.xlu1 %v568_v35, %s667_s12 }
 0x21e   : > { %374 = vrot.lane.b32.xlu1 %v568_v35, %s668_s14 }
 0x222   : > { %377 = vrot.lane.b32.xlu1 %v568_v35, %s666_s29 }
 0x28c   : > { %v372_v36 = vpop.permute.xlu1 %371 }
 0x28d   : > { %v381_v38 = vsel %vm380_vm1, %v568_v35, %v372_v36 }
 0x290   : > { %v375_v37 = vpop.permute.xlu1 %374 }
 0x291   : > { %v383_v39 = vsel %vm382_vm2, %v381_v38, %v375_v37 }
 0x294   : > { %v378_v40 = vpop.permute.xlu1 %377 }
 0x295   : > { %v385_v41 = vsel %vm384_vm3, %v383_v39, %v378_v40 }
 0x296   : > { %v389_v42 = vrot.slane %v385_v41, %v338_v3 }
 0x298   : > { %v390_v43 = vmul.f32 %v389_v42, %v809_v0  ;;  %v391_v44 = vmul.f32 %v389_v42, %v813_v2  ;;  %v392_v45 = vmul.f32 %v389_v42, %v819_v5  ;;  %v393_v46 = vmul.f32 %v389_v42, %v827_v9 }
 0x299   : > { %v394_v47 = vmul.f32 %v389_v42, %v811_v1  ;;  %v395_v48 = vmul.f32 %v389_v42, %v817_v4  ;;  %v396_v49 = vmul.f32 %v389_v42, %v821_v6  ;;  %v397_v0 = vmul.f32 %v389_v42, %v829_v10 }
 0x29a   : > { %398 = vst [vmem:[%s242_s26] sm:$0xff] %v390_v43  ;;  %399 = vst [vmem:[%s242_s26 + $0x8] sm:$0xff] %v391_v44 }
 0x29b   : > { %400 = vst [vmem:[%s242_s26 + $0x10] sm:$0xff] %v392_v45  ;;  %401 = vst [vmem:[%s242_s26 + $0x18] sm:$0xff] %v393_v46 }
 0x29c   : > { %402 = vst [vmem:[%s242_s26 + $0x20] sm:$0xff] %v394_v47  ;;  %403 = vst [vmem:[%s242_s26 + $0x28] sm:$0xff] %v395_v48 }
 0x29d   : > { %404 = vst [vmem:[%s242_s26 + $0x30] sm:$0xff] %v396_v49  ;;  %405 = vst [vmem:[%s242_s26 + $0x38] sm:$0xff] %v397_v0 }
 0x29e   : > { %610 = shalt.err (!%p607_p10)
}
 0x29f   : > { %s611_s9 = scalar_lea.hbm %s870_s15, 1024  ;;  %s615_s13 = scalar_lea.hbm %s925_s5, 2048 }
 0x2a0   : > { %p612_p0 = scmp.ne.s32.totalorder %s870_s15, %s611_s9  ;;  %p616_p1 = scmp.lt.s32.totalorder %s870_s15, %s925_s5 }
 0x2a1   : > { %p617_p3 = scmp.lt.s32.totalorder %s615_s13, %s611_s9 }
 0x2a2   : > { %p613_p2 = pnand %p612_p0, %p934_p12 }
 0x2a3   : > { %p618_p6 = por %p617_p3, %p616_p1 }
 0x2a4   : > { %p614_p9 = pneg %p613_p2 }
 0x2a6   : > { %p619_p11 = pnand %p618_p6, %p614_p9 }
 0x2a8   : > { %622 = shalt.err (!%p619_p11)
}
 0x2a9   : > { %s671_s29 = smov 512  }
 0x2aa   : > { %512 = dma.vmem_to_hbm [thread:$0]  (%p934_p12), %s876_s28, 1024, %s870_s15, %s407_s22, %s671_s29, %s671_s29, %s667_s12  }
 0x2ab PF: > { %s435_s14 = sand.u32 1, %s649_s18   ;;  %p935_p13 = scmp.ne.s32.totalorder %s931_s6, 0 }
 0x2ac   : > { %p936_p4 = scmp.ge.s32.totalorder %s661_s21, 2  ;;  %s436_s25 = scalar_lea.sflag [#allocation4], %s435_s14 }
 0x2ae   : > { %p519_p5 = pnand %p936_p4, %p935_p13 }
 0x2b0   : > { %p520_p7 = pneg %p519_p5 }
 0x2b2   : > { %644 = dma.done.wait (%p520_p7), %s436_s25, 1024  }
 0x2b3   : > { %646 = vsyncadd (%p520_p7), %s436_s25, 4294966272  ;;  %p18_p8 = scmp.ge.s32.totalorder %s727_s24, 4   ;;  %s937_s18 = smov %s653_s19 }
 0x2b4   : > { %s938_s19 = smov %s657_s20  ;;  %s939_s20 = smov %s739_s27 }
 0x2b5   : > { %s940_s21 = smov %s727_s24  ;;  %20 = sbr.rel (!%p18_p8) target bundleno = 5 (0x5), region = 85 }
 0x2ba   :  { %441 = vsyncpa [#allocation3], 1 }
 0x2bb   :  { %443 = vsyncpa [#allocation3 + $0x1], 1 }
 0x2bc   :  { %444 = vsyncpa [#allocation4], 1 }
 0x2bd   :  { %446 = vsyncpa [#allocation4 + $0x1], 1 }

</bundles_post_ra>
